<compile_context>
chip_gen: v7x
topology: tpu7x:2x2x1
jax: 0.10.0
libtpu: 0.0.40
codegen_flags: <defaults>
</compile_context>

<pallas_src>
from functools import partial

import jax
import jax.numpy as jnp
from jax.experimental import pallas as pl
from jax.experimental.pallas import tpu as pltpu


# ----------------------------- fused kernel ---------------------------------


def _fused_forward_kernel(mean_ref, x_ref, mask_ref, wcol_ref, cb_ref,
                          wfc_ref, bfc_ref, o_ref, col_ref, *, C, H, W, B_n):
    # mean_ref: (C, 1)        x_ref:  (1, C, B_n*H*W)   mask_ref: (9, B_n*H*W)
    # wcol_ref: (F, 9*C)      cb_ref: (F, 1)
    # wfc_ref:  (F, Kpad)     bfc_ref:(1, Kpad)         o_ref: (1, B_n, Kpad)
    # col_ref:  VMEM (9*C, B_n*H*W) im2col scratch
    HW = H * W
    BHW = B_n * HW

    # 1) channel-mean subtract (the 1/std scale is folded into wcol_ref).
    xm = x_ref[0] - mean_ref[...]                          # (C, BHW)

    # 2) im2col on the flat lane axis: XLU roll + boundary mask per tap.
    #    At valid positions roll(xm, -(dh*W+dw)) equals x[c, h+dh, w+dw];
    #    out-of-image positions (incl. cross-image / wrap lanes) are masked
    #    to 0, reproducing Conv2d's zero padding of the normalized input.
    for kh in range(3):                                    # statically unrolled
        for kw in range(3):
            t = kh * 3 + kw
            shift = (-((kh - 1) * W + (kw - 1))) % BHW
            rolled = xm if shift == 0 else pltpu.roll(xm, shift=shift, axis=1)
            col_ref[t * C:(t + 1) * C, :] = rolled * mask_ref[t:t + 1, :]

    # 3) conv3x3 = one MXU matmul over all B_n images, + bias + ReLU.
    acc = jnp.dot(wcol_ref[...], col_ref[...],
                  preferred_element_type=jnp.float32)      # (F, BHW)
    acc = jnp.maximum(acc + cb_ref[...], 0.0)

    # 4) per-image global-average-pool + linear head; lane-dense stores.
    for b in range(B_n):
        feat = jnp.mean(acc[:, b * HW:(b + 1) * HW], axis=-1,
                        keepdims=True)                     # (F, 1)
        logits = (jnp.sum(feat * wfc_ref[...], axis=0, keepdims=True)
                  + bfc_ref[...])                          # (1, Kpad)
        o_ref[0, pl.ds(b, 1), :] = logits


# ----------------------------- param repack ---------------------------------


def prepare_params(params):
    """One-time repack of PyTorch-layout weights into kernel-friendly layouts."""
    conv_w = params["conv_w"].astype(jnp.float32)           # (F, C, 3, 3) OIHW
    F, C = conv_w.shape[0], conv_w.shape[1]
    fc_w = params["fc_w"].astype(jnp.float32)               # (F, K)
    K = fc_w.shape[1]
    kpad = ((K + 127) // 128) * 128

    # Fold per-channel 1/std into the conv weights (exact: the conv zero-pads
    # the normalized input, and zeros scale to zeros either way).
    inv_std = (1.0 / params["std"]).astype(jnp.float32)      # (C,)
    conv_w_s = conv_w * inv_std.reshape(1, C, 1, 1)
    # (F, C, 3, 3) -> (F, 9*C), tap-major / channel-minor im2col layout.
    w_col = jnp.transpose(conv_w_s, (0, 2, 3, 1)).reshape(F, 9 * C)

    fc_w_pad = jnp.zeros((F, kpad), jnp.float32).at[:, :K].set(fc_w)
    fc_b_pad = jnp.zeros((1, kpad), jnp.float32).at[:, :K].set(
        params["fc_b"].astype(jnp.float32).reshape(1, K))

    return {
        "mean": params["mean"].astype(jnp.float32).reshape(C, 1),   # (C, 1)
        "w_col": w_col,                                             # (F, 9*C)
        "conv_b": params["conv_b"].astype(jnp.float32).reshape(F, 1),
        "fc_w_pad": fc_w_pad,                                       # (F, Kpad)
        "fc_b_pad": fc_b_pad,                                       # (1, Kpad)
        "num_classes": K,
    }


# ----------------------------- wrapper --------------------------------------


def torch_model_forward(x, prep, block_n=2):
    """x: (N, C, H, W) float32, NCHW; prep: output of prepare_params."""
    N, C, H, W = x.shape
    HW = H * W
    if N % block_n != 0:
        block_n = 1
    bn = block_n
    G = N // bn
    BHW = bn * HW

    F, ktaps = prep["w_col"].shape                      # ktaps = 9*C
    kpad = prep["fc_w_pad"].shape[1]
    K = prep["num_classes"]

    # Lane-dense repack: (N, C, H, W) -> (G, C, bn*H*W), image-major lanes.
    xg = (x.reshape(G, bn, C, HW)
           .transpose(0, 2, 1, 3)
           .reshape(G, C, BHW))

    # 3x3 zero-pad boundary masks on the flat HW lane axis, one row per tap,
    # tiled across the bn images batched into one grid step.
    rr = jnp.arange(H, dtype=jnp.int32).reshape(H, 1)
    cc = jnp.arange(W, dtype=jnp.int32).reshape(1, W)
    mask_rows = []
    for kh in range(3):
        for kw in range(3):
            dh, dw = kh - 1, kw - 1
            valid = ((rr + dh >= 0) & (rr + dh < H) &
                     (cc + dw >= 0) & (cc + dw < W))
            mask_rows.append(valid.reshape(1, HW))
    masks = jnp.concatenate(mask_rows, axis=0).astype(jnp.float32)   # (9, HW)
    masks = jnp.tile(masks, (1, bn))                                 # (9, BHW)

    out = pl.pallas_call(
        partial(_fused_forward_kernel, C=C, H=H, W=W, B_n=bn),
        out_shape=jax.ShapeDtypeStruct((G, bn, kpad), jnp.float32),
        grid=(G,),
        in_specs=[
            pl.BlockSpec((C, 1), lambda g: (0, 0)),             # mean
            pl.BlockSpec((1, C, BHW), lambda g: (g, 0, 0)),     # x (lane-dense)
            pl.BlockSpec((9, BHW), lambda g: (0, 0)),           # tap masks
            pl.BlockSpec((F, ktaps), lambda g: (0, 0)),         # conv w (im2col)
            pl.BlockSpec((F, 1), lambda g: (0, 0)),             # conv bias
            pl.BlockSpec((F, kpad), lambda g: (0, 0)),          # fc w
            pl.BlockSpec((1, kpad), lambda g: (0, 0)),          # fc b
        ],
        out_specs=pl.BlockSpec((1, bn, kpad), lambda g: (g, 0, 0)),
        scratch_shapes=[
            pltpu.VMEM((ktaps, BHW), jnp.float32),              # im2col slab
        ],
        compiler_params=pltpu.CompilerParams(
            dimension_semantics=("parallel",)),
    )(prep["mean"], xg, masks, prep["w_col"], prep["conv_b"],
      prep["fc_w_pad"], prep["fc_b_pad"])

    return out.reshape(N, kpad)[:, :K]


# ----------------------------- driver ---------------------------------------


if __name__ == "__main__":
    key = jax.random.PRNGKey(0)
    k1, k2, k3, k4, k5 = jax.random.split(key, 5)

    N, C, H, W = 4, 3, 16, 16     # small NCHW image batch (2 groups of 2)
    F, K = 8, 10                  # backbone feature width / num classes

    x = jax.random.uniform(k1, (N, C, H, W), dtype=jnp.float32)

    params = {
        # deterministic, ImageNet-style per-channel normalization constants
        "mean": jnp.array([0.485, 0.456, 0.406], dtype=jnp.float32),
        "std": jnp.array([0.229, 0.224, 0.225], dtype=jnp.float32),
        # deterministic synthetic backbone weights
        "conv_w": 0.1 * jax.random.normal(k2, (F, C, 3, 3), dtype=jnp.float32),
        "conv_b": 0.01 * jax.random.normal(k3, (F,), dtype=jnp.float32),
        "fc_w": 0.1 * jax.random.normal(k4, (F, K), dtype=jnp.float32),
        "fc_b": 0.01 * jax.random.normal(k5, (K,), dtype=jnp.float32),
    }

    prep = prepare_params(params)
    out = torch_model_forward(x, prep, block_n=2)
    jax.block_until_ready(out)
    assert out.shape == (N, K)

    # pure-JAX reference of the same forward for a correctness gate.
    xn = (x - params["mean"].reshape(1, C, 1, 1)) / params["std"].reshape(1, C, 1, 1)
    conv = jax.lax.conv_general_dilated(
        xn, params["conv_w"], window_strides=(1, 1), padding="SAME",
        dimension_numbers=("NCHW", "OIHW", "NCHW"))
    conv = jnp.maximum(conv + params["conv_b"].reshape(1, F, 1, 1), 0.0)
    feats = jnp.mean(conv, axis=(2, 3))
    ref = feats @ params["fc_w"] + params["fc_b"]
    assert jnp.allclose(out, ref, atol=2e-4, rtol=2e-4), \
        float(jnp.max(jnp.abs(out - ref)))

    print("KERNEL_OK")
</pallas_src>

<mosaic_0001>
module attributes {stable_mosaic.version = 11 : i64} {
  func.func @_fused_forward_kernel(%arg0: i32, %arg1: memref<3x1xf32, #tpu.memory_space<vmem>>, %arg2: memref<1x3x512xf32, #tpu.memory_space<vmem>>, %arg3: memref<9x512xf32, #tpu.memory_space<vmem>>, %arg4: memref<8x27xf32, #tpu.memory_space<vmem>>, %arg5: memref<8x1xf32, #tpu.memory_space<vmem>>, %arg6: memref<8x128xf32, #tpu.memory_space<vmem>>, %arg7: memref<1x128xf32, #tpu.memory_space<vmem>>, %arg8: memref<1x2x128xf32, #tpu.memory_space<vmem>>, %arg9: memref<27x512xf32, #tpu.memory_space<vmem>>) attributes {dimension_semantics = [#tpu.dimension_semantics<parallel>], iteration_bounds = array<i64: 2>, scalar_prefetch = 0 : i64, scratch_operands = 1 : i64, tpu.core_type = #tpu.core_type<tc>, window_params = [{pipeline_mode = #tpu.pipeline_mode<synchronous>, transform_indices = @transform_0, window_bounds = array<i64: 3, 1>}, {transform_indices = @transform_1, window_bounds = array<i64: 1, 3, 512>}, {pipeline_mode = #tpu.pipeline_mode<synchronous>, transform_indices = @transform_2, window_bounds = array<i64: 9, 512>}, {pipeline_mode = #tpu.pipeline_mode<synchronous>, transform_indices = @transform_3, window_bounds = array<i64: 8, 27>}, {pipeline_mode = #tpu.pipeline_mode<synchronous>, transform_indices = @transform_4, window_bounds = array<i64: 8, 1>}, {pipeline_mode = #tpu.pipeline_mode<synchronous>, transform_indices = @transform_5, window_bounds = array<i64: 8, 128>}, {pipeline_mode = #tpu.pipeline_mode<synchronous>, transform_indices = @transform_6, window_bounds = array<i64: 1, 128>}, {transform_indices = @transform_7, window_bounds = array<i64: 1, 2, 128>}]} {
    %c0 = arith.constant 0 : index
    %c0_0 = arith.constant 0 : index
    %c0_1 = arith.constant 0 : index
    %0 = vector.load %arg2[%c0, %c0_0, %c0_1] : memref<1x3x512xf32, #tpu.memory_space<vmem>>, vector<1x3x512xf32>
    %1 = vector.shape_cast %0 : vector<1x3x512xf32> to vector<3x512xf32>
    %c0_2 = arith.constant 0 : index
    %c0_3 = arith.constant 0 : index
    %2 = vector.load %arg1[%c0_2, %c0_3] : memref<3x1xf32, #tpu.memory_space<vmem>>, vector<3x1xf32>
    %3 = vector.broadcast %2 : vector<3x1xf32> to vector<3x512xf32>
    %4 = arith.subf %1, %3 : vector<3x512xf32>
    %c17_i32 = arith.constant 17 : i32
    %5 = tpu.dynamic_rotate %4 by %c17_i32 dim 1 : vector<3x512xf32>, i32 -> vector<3x512xf32>
    %c0_4 = arith.constant 0 : index
    %c0_5 = arith.constant 0 : index
    %6 = vector.load %arg3[%c0_4, %c0_5] : memref<9x512xf32, #tpu.memory_space<vmem>>, vector<1x512xf32>
    %7 = vector.broadcast %6 : vector<1x512xf32> to vector<3x512xf32>
    %8 = arith.mulf %5, %7 : vector<3x512xf32>
    %c0_6 = arith.constant 0 : index
    %c0_7 = arith.constant 0 : index
    %9 = vector.load %arg9[%c0_6, %c0_7] : memref<27x512xf32, #tpu.memory_space<vmem>>, vector<3x512xf32>
    tpu.vector_store %arg9[%c0_6, %c0_7], %8 {strides = array<i32>} : memref<27x512xf32, #tpu.memory_space<vmem>>, vector<3x512xf32>,
    %c16_i32 = arith.constant 16 : i32
    %10 = tpu.dynamic_rotate %4 by %c16_i32 dim 1 : vector<3x512xf32>, i32 -> vector<3x512xf32>
    %c1 = arith.constant 1 : index
    %c0_8 = arith.constant 0 : index
    %11 = vector.load %arg3[%c1, %c0_8] : memref<9x512xf32, #tpu.memory_space<vmem>>, vector<1x512xf32>
    %12 = vector.broadcast %11 : vector<1x512xf32> to vector<3x512xf32>
    %13 = arith.mulf %10, %12 : vector<3x512xf32>
    %c3 = arith.constant 3 : index
    %c0_9 = arith.constant 0 : index
    %14 = vector.load %arg9[%c3, %c0_9] : memref<27x512xf32, #tpu.memory_space<vmem>>, vector<3x512xf32>
    tpu.vector_store %arg9[%c3, %c0_9], %13 {strides = array<i32>} : memref<27x512xf32, #tpu.memory_space<vmem>>, vector<3x512xf32>,
    %c15_i32 = arith.constant 15 : i32
    %15 = tpu.dynamic_rotate %4 by %c15_i32 dim 1 : vector<3x512xf32>, i32 -> vector<3x512xf32>
    %c2 = arith.constant 2 : index
    %c0_10 = arith.constant 0 : index
    %16 = vector.load %arg3[%c2, %c0_10] : memref<9x512xf32, #tpu.memory_space<vmem>>, vector<1x512xf32>
    %17 = vector.broadcast %16 : vector<1x512xf32> to vector<3x512xf32>
    %18 = arith.mulf %15, %17 : vector<3x512xf32>
    %c6 = arith.constant 6 : index
    %c0_11 = arith.constant 0 : index
    %19 = vector.load %arg9[%c6, %c0_11] : memref<27x512xf32, #tpu.memory_space<vmem>>, vector<3x512xf32>
    tpu.vector_store %arg9[%c6, %c0_11], %18 {strides = array<i32>} : memref<27x512xf32, #tpu.memory_space<vmem>>, vector<3x512xf32>,
    %c1_i32 = arith.constant 1 : i32
    %20 = tpu.dynamic_rotate %4 by %c1_i32 dim 1 : vector<3x512xf32>, i32 -> vector<3x512xf32>
    %c3_12 = arith.constant 3 : index
    %c0_13 = arith.constant 0 : index
    %21 = vector.load %arg3[%c3_12, %c0_13] : memref<9x512xf32, #tpu.memory_space<vmem>>, vector<1x512xf32>
    %22 = vector.broadcast %21 : vector<1x512xf32> to vector<3x512xf32>
    %23 = arith.mulf %20, %22 : vector<3x512xf32>
    %c9 = arith.constant 9 : index
    %c0_14 = arith.constant 0 : index
    %24 = vector.load %arg9[%c9, %c0_14] : memref<27x512xf32, #tpu.memory_space<vmem>>, vector<3x512xf32>
    tpu.vector_store %arg9[%c9, %c0_14], %23 {strides = array<i32>} : memref<27x512xf32, #tpu.memory_space<vmem>>, vector<3x512xf32>,
    %c4 = arith.constant 4 : index
    %c0_15 = arith.constant 0 : index
    %25 = vector.load %arg3[%c4, %c0_15] : memref<9x512xf32, #tpu.memory_space<vmem>>, vector<1x512xf32>
    %26 = vector.broadcast %25 : vector<1x512xf32> to vector<3x512xf32>
    %27 = arith.mulf %4, %26 : vector<3x512xf32>
    %c12 = arith.constant 12 : index
    %c0_16 = arith.constant 0 : index
    %28 = vector.load %arg9[%c12, %c0_16] : memref<27x512xf32, #tpu.memory_space<vmem>>, vector<3x512xf32>
    tpu.vector_store %arg9[%c12, %c0_16], %27 {strides = array<i32>} : memref<27x512xf32, #tpu.memory_space<vmem>>, vector<3x512xf32>,
    %c511_i32 = arith.constant 511 : i32
    %29 = tpu.dynamic_rotate %4 by %c511_i32 dim 1 : vector<3x512xf32>, i32 -> vector<3x512xf32>
    %c5 = arith.constant 5 : index
    %c0_17 = arith.constant 0 : index
    %30 = vector.load %arg3[%c5, %c0_17] : memref<9x512xf32, #tpu.memory_space<vmem>>, vector<1x512xf32>
    %31 = vector.broadcast %30 : vector<1x512xf32> to vector<3x512xf32>
    %32 = arith.mulf %29, %31 : vector<3x512xf32>
    %c15 = arith.constant 15 : index
    %c0_18 = arith.constant 0 : index
    %33 = vector.load %arg9[%c15, %c0_18] : memref<27x512xf32, #tpu.memory_space<vmem>>, vector<3x512xf32>
    tpu.vector_store %arg9[%c15, %c0_18], %32 {strides = array<i32>} : memref<27x512xf32, #tpu.memory_space<vmem>>, vector<3x512xf32>,
    %c497_i32 = arith.constant 497 : i32
    %34 = tpu.dynamic_rotate %4 by %c497_i32 dim 1 : vector<3x512xf32>, i32 -> vector<3x512xf32>
    %c6_19 = arith.constant 6 : index
    %c0_20 = arith.constant 0 : index
    %35 = vector.load %arg3[%c6_19, %c0_20] : memref<9x512xf32, #tpu.memory_space<vmem>>, vector<1x512xf32>
    %36 = vector.broadcast %35 : vector<1x512xf32> to vector<3x512xf32>
    %37 = arith.mulf %34, %36 : vector<3x512xf32>
    %c18 = arith.constant 18 : index
    %c0_21 = arith.constant 0 : index
    %38 = vector.load %arg9[%c18, %c0_21] : memref<27x512xf32, #tpu.memory_space<vmem>>, vector<3x512xf32>
    tpu.vector_store %arg9[%c18, %c0_21], %37 {strides = array<i32>} : memref<27x512xf32, #tpu.memory_space<vmem>>, vector<3x512xf32>,
    %c496_i32 = arith.constant 496 : i32
    %39 = tpu.dynamic_rotate %4 by %c496_i32 dim 1 : vector<3x512xf32>, i32 -> vector<3x512xf32>
    %c7 = arith.constant 7 : index
    %c0_22 = arith.constant 0 : index
    %40 = vector.load %arg3[%c7, %c0_22] : memref<9x512xf32, #tpu.memory_space<vmem>>, vector<1x512xf32>
    %41 = vector.broadcast %40 : vector<1x512xf32> to vector<3x512xf32>
    %42 = arith.mulf %39, %41 : vector<3x512xf32>
    %c21 = arith.constant 21 : index
    %c0_23 = arith.constant 0 : index
    %43 = vector.load %arg9[%c21, %c0_23] : memref<27x512xf32, #tpu.memory_space<vmem>>, vector<3x512xf32>
    tpu.vector_store %arg9[%c21, %c0_23], %42 {strides = array<i32>} : memref<27x512xf32, #tpu.memory_space<vmem>>, vector<3x512xf32>,
    %c495_i32 = arith.constant 495 : i32
    %44 = tpu.dynamic_rotate %4 by %c495_i32 dim 1 : vector<3x512xf32>, i32 -> vector<3x512xf32>
    %c8 = arith.constant 8 : index
    %c0_24 = arith.constant 0 : index
    %45 = vector.load %arg3[%c8, %c0_24] : memref<9x512xf32, #tpu.memory_space<vmem>>, vector<1x512xf32>
    %46 = vector.broadcast %45 : vector<1x512xf32> to vector<3x512xf32>
    %47 = arith.mulf %44, %46 : vector<3x512xf32>
    %c24 = arith.constant 24 : index
    %c0_25 = arith.constant 0 : index
    %48 = vector.load %arg9[%c24, %c0_25] : memref<27x512xf32, #tpu.memory_space<vmem>>, vector<3x512xf32>
    tpu.vector_store %arg9[%c24, %c0_25], %47 {strides = array<i32>} : memref<27x512xf32, #tpu.memory_space<vmem>>, vector<3x512xf32>,
    %c0_26 = arith.constant 0 : index
    %c0_27 = arith.constant 0 : index
    %49 = vector.load %arg4[%c0_26, %c0_27] : memref<8x27xf32, #tpu.memory_space<vmem>>, vector<8x27xf32>
    %c0_28 = arith.constant 0 : index
    %c0_29 = arith.constant 0 : index
    %50 = vector.load %arg9[%c0_28, %c0_29] : memref<27x512xf32, #tpu.memory_space<vmem>>, vector<27x512xf32>
    %cst = arith.constant dense<0.000000e+00> : vector<8x512xf32>
    %51 = tpu.matmul %49, %50, %cst {dimension_numbers = #tpu.dot_dimension_numbers<[1], [0], [0], [1], [0, 0, 1, 1], [], []>} : vector<8x27xf32>, vector<27x512xf32>, vector<8x512xf32> -> vector<8x512xf32>
    %c0_30 = arith.constant 0 : index
    %c0_31 = arith.constant 0 : index
    %52 = vector.load %arg5[%c0_30, %c0_31] : memref<8x1xf32, #tpu.memory_space<vmem>>, vector<8x1xf32>
    %53 = vector.broadcast %52 : vector<8x1xf32> to vector<8x512xf32>
    %54 = arith.addf %51, %53 : vector<8x512xf32>
    %cst_32 = arith.constant 0.000000e+00 : f32
    %55 = vector.broadcast %cst_32 : f32 to vector<8x512xf32>
    %56 = arith.maximumf %54, %55 : vector<8x512xf32>
    %57 = vector.extract_strided_slice %56 {offsets = [0, 0], sizes = [8, 256], strides = [1, 1]} : vector<8x512xf32> to vector<8x256xf32>
    %cst_33 = arith.constant dense<0.000000e+00> : vector<8xf32>
    %58 = vector.multi_reduction <add>, %57, %cst_33 [1] : vector<8x256xf32> to vector<8xf32>
    %59 = vector.shape_cast %58 : vector<8xf32> to vector<8x1xf32>
    %cst_34 = arith.constant 2.560000e+02 : f32
    %60 = vector.broadcast %cst_34 : f32 to vector<8x1xf32>
    %61 = arith.divf %59, %60 : vector<8x1xf32>
    %c0_35 = arith.constant 0 : index
    %c0_36 = arith.constant 0 : index
    %62 = vector.load %arg6[%c0_35, %c0_36] : memref<8x128xf32, #tpu.memory_space<vmem>>, vector<8x128xf32>
    %63 = vector.broadcast %61 : vector<8x1xf32> to vector<8x128xf32>
    %64 = arith.mulf %63, %62 : vector<8x128xf32>
    %cst_37 = arith.constant dense<0.000000e+00> : vector<128xf32>
    %65 = vector.multi_reduction <add>, %64, %cst_37 [0] : vector<8x128xf32> to vector<128xf32>
    %66 = vector.shape_cast %65 : vector<128xf32> to vector<1x128xf32>
    %c0_38 = arith.constant 0 : index
    %c0_39 = arith.constant 0 : index
    %67 = vector.load %arg7[%c0_38, %c0_39] : memref<1x128xf32, #tpu.memory_space<vmem>>, vector<1x128xf32>
    %68 = arith.addf %66, %67 : vector<1x128xf32>
    %c0_40 = arith.constant 0 : index
    %c0_41 = arith.constant 0 : index
    %c0_42 = arith.constant 0 : index
    %69 = vector.load %arg8[%c0_40, %c0_41, %c0_42] : memref<1x2x128xf32, #tpu.memory_space<vmem>>, vector<1x1x128xf32>
    %70 = vector.shape_cast %69 : vector<1x1x128xf32> to vector<1x128xf32>
    %71 = vector.shape_cast %68 : vector<1x128xf32> to vector<1x1x128xf32>
    tpu.vector_store %arg8[%c0_40, %c0_41, %c0_42], %71 {strides = array<i32>} : memref<1x2x128xf32, #tpu.memory_space<vmem>>, vector<1x1x128xf32>,
    %72 = vector.extract_strided_slice %56 {offsets = [0, 256], sizes = [8, 256], strides = [1, 1]} : vector<8x512xf32> to vector<8x256xf32>
    %cst_43 = arith.constant dense<0.000000e+00> : vector<8xf32>
    %73 = vector.multi_reduction <add>, %72, %cst_43 [1] : vector<8x256xf32> to vector<8xf32>
    %74 = vector.shape_cast %73 : vector<8xf32> to vector<8x1xf32>
    %cst_44 = arith.constant 2.560000e+02 : f32
    %75 = vector.broadcast %cst_44 : f32 to vector<8x1xf32>
    %76 = arith.divf %74, %75 : vector<8x1xf32>
    %c0_45 = arith.constant 0 : index
    %c0_46 = arith.constant 0 : index
    %77 = vector.load %arg6[%c0_45, %c0_46] : memref<8x128xf32, #tpu.memory_space<vmem>>, vector<8x128xf32>
    %78 = vector.broadcast %76 : vector<8x1xf32> to vector<8x128xf32>
    %79 = arith.mulf %78, %77 : vector<8x128xf32>
    %cst_47 = arith.constant dense<0.000000e+00> : vector<128xf32>
    %80 = vector.multi_reduction <add>, %79, %cst_47 [0] : vector<8x128xf32> to vector<128xf32>
    %81 = vector.shape_cast %80 : vector<128xf32> to vector<1x128xf32>
    %c0_48 = arith.constant 0 : index
    %c0_49 = arith.constant 0 : index
    %82 = vector.load %arg7[%c0_48, %c0_49] : memref<1x128xf32, #tpu.memory_space<vmem>>, vector<1x128xf32>
    %83 = arith.addf %81, %82 : vector<1x128xf32>
    %c0_50 = arith.constant 0 : index
    %c1_51 = arith.constant 1 : index
    %c0_52 = arith.constant 0 : index
    %84 = vector.load %arg8[%c0_50, %c1_51, %c0_52] : memref<1x2x128xf32, #tpu.memory_space<vmem>>, vector<1x1x128xf32>
    %85 = vector.shape_cast %84 : vector<1x1x128xf32> to vector<1x128xf32>
    %86 = vector.shape_cast %83 : vector<1x128xf32> to vector<1x1x128xf32>
    tpu.vector_store %arg8[%c0_50, %c1_51, %c0_52], %86 {strides = array<i32>} : memref<1x2x128xf32, #tpu.memory_space<vmem>>, vector<1x1x128xf32>,
    return
  }
  func.func @transform_0(%arg0: i32) -> (i32, i32) {
    %c0_i32 = arith.constant 0 : i32
    %c0_i32_0 = arith.constant 0 : i32
    %c0_i32_1 = arith.constant 0 : i32
    return %c0_i32, %c0_i32_0 : i32, i32
  }
  func.func @transform_1(%arg0: i32) -> (i32, i32, i32) {
    %c0_i32 = arith.constant 0 : i32
    %c0_i32_0 = arith.constant 0 : i32
    %c0_i32_1 = arith.constant 0 : i32
    return %arg0, %c0_i32, %c0_i32_0 : i32, i32, i32
  }
  func.func @transform_2(%arg0: i32) -> (i32, i32) {
    %c0_i32 = arith.constant 0 : i32
    %c0_i32_0 = arith.constant 0 : i32
    %c0_i32_1 = arith.constant 0 : i32
    return %c0_i32, %c0_i32_0 : i32, i32
  }
  func.func @transform_3(%arg0: i32) -> (i32, i32) {
    %c0_i32 = arith.constant 0 : i32
    %c0_i32_0 = arith.constant 0 : i32
    %c0_i32_1 = arith.constant 0 : i32
    return %c0_i32, %c0_i32_0 : i32, i32
  }
  func.func @transform_4(%arg0: i32) -> (i32, i32) {
    %c0_i32 = arith.constant 0 : i32
    %c0_i32_0 = arith.constant 0 : i32
    %c0_i32_1 = arith.constant 0 : i32
    return %c0_i32, %c0_i32_0 : i32, i32
  }
  func.func @transform_5(%arg0: i32) -> (i32, i32) {
    %c0_i32 = arith.constant 0 : i32
    %c0_i32_0 = arith.constant 0 : i32
    %c0_i32_1 = arith.constant 0 : i32
    return %c0_i32, %c0_i32_0 : i32, i32
  }
  func.func @transform_6(%arg0: i32) -> (i32, i32) {
    %c0_i32 = arith.constant 0 : i32
    %c0_i32_0 = arith.constant 0 : i32
    %c0_i32_1 = arith.constant 0 : i32
    return %c0_i32, %c0_i32_0 : i32, i32
  }
  func.func @transform_7(%arg0: i32) -> (i32, i32, i32) {
    %c0_i32 = arith.constant 0 : i32
    %c0_i32_0 = arith.constant 0 : i32
    %c0_i32_1 = arith.constant 0 : i32
    return %arg0, %c0_i32, %c0_i32_0 : i32, i32, i32
  }
}

</mosaic_0001>

<bundles_post_ra>
// kernel: tpu_custom_call.1
= control target key start
LH: loop header
LB: loop body
LE: loop exit
PB: predicated region body
PF: predicated region fallthrough
CT: control target
= control target key end

     0   :  { %12 = vsyncpa [#allocation4], 0  ;;  %s1557_s0 = inlined_call_operand.vmem [shape: f32[3,1], index: 0, kind: input, shape index: {}]   ;;  %s1558_s1 = inlined_call_operand.vmem [shape: f32[2,3,512], index: 1, kind: input, shape index: {}]   ;;  %s1559_s2 = inlined_call_operand.vmem [shape: f32[9,512], index: 2, kind: input, shape index: {}]   ;;  %s1560_s3 = inlined_call_operand.vmem [shape: f32[8,27], index: 3, kind: input, shape index: {}]   ;;  %s1561_s4 = inlined_call_operand.vmem [shape: f32[8,1], index: 4, kind: input, shape index: {}]   ;;  %s1562_s5 = inlined_call_operand.vmem [shape: f32[8,128], index: 5, kind: input, shape index: {}]   ;;  %s1563_s6 = inlined_call_operand.vmem [shape: f32[1,128], index: 6, kind: input, shape index: {}]   ;;  %s1564_s7 = inlined_call_operand.hbm [shape: f32[2,2,128], index: 7, kind: output, shape index: {}]  }
   0x1   :  { %14 = vsyncpa [#allocation4 + $0x1], 0  ;;  %s1274_s24 = smov 0   ;;  %s1276_s25 = smov 0  }
   0x2   :  { %s1278_s26 = smov 0   ;;  %s1280_s27 = smov 0  }
   0x3 LB: > { %s1295_s28 = sadd.s32 4294967295, %s1219_s27   ;;  %s1058_s29 = sadd.s32 4294967294, %s1219_s27   ;;  %s1219_s27 = sphi %s1280_s27, %s1570_s27   ;;  %s1215_s26 = sphi %s1278_s26, %s1569_s26   ;;  %s1211_s25 = sphi %s1276_s25, %s1568_s25   ;;  %s1207_s24 = sphi %s1274_s24, %s1567_s24  }
   0x4   : > { %s1299_s30 = sadd.s32 1, %s1219_s27   ;;  %s179_s8 = sadd.s32 1, %s1215_s26 }
   0x5   : > { %s176_s9 = ssub.s32 %s1219_s27, %s1299_s30  ;;  %p189_p0 = scmp.ne.s32.totalorder %s1215_s26, %s1211_s25 }
   0x6   : > { %p177_p1 = scmp.eq.s32.totalorder %s176_s9, 0  ;;  %p190_p2 = scmp.eq.s32.totalorder %s1295_s28, 1 }
   0x7   : > { %p195_p3 = scmp.ne.s32.totalorder %s1211_s25, %s1207_s24  ;;  %p196_p4 = scmp.eq.s32.totalorder %s1058_s29, 1 }
   0x8   : > { %s1310_s10 = scalar_select %p177_p1, %s1215_s26, %s179_s8  }
   0x9   : > { %p1312_p5 = por %p190_p2, %p189_p0  ;;  %p1316_p6 = por %p196_p4, %p195_p3 }
   0xa   : > { %p1061_p7 = scmp.ge.s32.totalorder %s1219_s27, 1  ;;  %p240_p8 = scmp.lt.s32.totalorder %s1219_s27, 3 }
   0xc   : > { %p241_p9 = pnand %p1061_p7, %p240_p8 }
   0xd   : > { %v279_v0 = vld [vmem:[%s1557_s0] sm:$0x7] (!%p241_p9)  ;;  %v1221_v1 = vmov (!%p241_p9), 0   ;;  %v287_v2 = vlaneseq (!%p241_p9)  ;;  %p272_p10 = scmp.lt.s32.totalorder (!%p241_p9), %s1295_s28, 1  ;;  %v1222_v3 = vmov (!%p241_p9), 839922192  }
   0xe   : > { %244 = sbr.rel (%p241_p9) target bundleno = 732 (0x2dc), region = 48  ;;  %1155 = vset.pattern.permute.xlu0 (!%p241_p9), %v1221_v1  ;;  %1156 = vset.pattern.permute.xlu1 (!%p241_p9), %v1221_v1  ;;  %v285_v4 = vunpack.c.l.s4 (!%p241_p9), %v1222_v3  ;;  %v1068_v11 = vld [vmem:[%s1559_s2 + $0x4] ss:$8 sm:$0xf] (!%p241_p9)  ;;  %s1223_s22 = smov (!%p241_p9), 16   ;;  %v1231_v31 = vmov (!%p241_p9), 0.0  }
   0xf   : > { %282 = vperm.xlu0 (!%p241_p9), %1155, %v279_v0   ;;  %v288_v5 = vshrl.u32 (!%p241_p9), %v287_v2, 7  ;;  %s1224_s23 = smov (!%p241_p9), 15   ;;  %s1225_s29 = smov (!%p241_p9), 1   ;;  %872 = vmatprep.mubr.f32.mxu0 (!%p241_p9), %v1231_v31  ;;  %v785_v32 = vld [vmem:[%s1561_s4] sm:$0xff] (!%p241_p9)  ;;  %v1354_v33 = vand.u32 (!%p241_p9), 127, %v287_v2  ;;  %vm795_vm8 = vcmask (!%p241_p9), 1042432  }
  0x10   : > { %v286_v6 = vunpack.c.0.s8 (!%p241_p9), %v285_v4  ;;  %s1226_s8 = smov (!%p241_p9), 127   ;;  %s1227_s9 = smov (!%p241_p9), 17   ;;  %943 = vmatprep.mubr.f32.mxu1 (!%p241_p9), %v1231_v31  ;;  %v1359_v34 = vld [vmem:[%s1559_s2 + $0x1] ss:$8 sm:$0xf] (!%p241_p9)  ;;  %vm1232_vm9 = vmmov (!%p241_p9), 1  }
  0x11   : > { %v1328_v7 = vsub.s32 (!%p241_p9), 2, %v288_v5  ;;  %v1330_v8 = vsub.s32 (!%p241_p9), 3, %v288_v5  ;;  %v1332_v9 = vsub.s32 (!%p241_p9), 0, %v288_v5  ;;  %v1334_v10 = vsub.s32 (!%p241_p9), 1, %v288_v5  ;;  %s1228_s13 = smov (!%p241_p9), 113   ;;  %s1229_s14 = smov (!%p241_p9), 112   ;;  %vm1089_vm10 = vmpackc.low (!%p241_p9), %vm795_vm8, %vm1232_vm9 }
  0x12   : > { %v289_v12 = vsub.s32 (!%p241_p9), %v286_v6, %v288_v5  ;;  %vm353_vm0 = vcmp.lt.s32.totalorder (!%p241_p9), %v1354_v33, 16  ;;  %v1066_v39 = vld [vmem:[%s1559_s2 + $0x2] ss:$8 sm:$0xf] (!%p241_p9)  ;;  %vm409_vm1 = vcmp.lt.s32.totalorder (!%p241_p9), %v1354_v33, 15  ;;  %vm469_vm2 = vcmp.lt.s32.totalorder (!%p241_p9), %v1354_v33, 1 }
  0x13   : > { %v531_v13 = vrot.slane (!%p241_p9), %v1068_v11, %v1328_v7  ;;  %v535_v14 = vrot.slane (!%p241_p9), %v1068_v11, %v1330_v8  ;;  %v523_v15 = vrot.slane (!%p241_p9), %v1068_v11, %v1332_v9  ;;  %v527_v16 = vrot.slane (!%p241_p9), %v1068_v11, %v1334_v10  ;;  %v1067_v58 = vld [vmem:[%s1559_s2 + $0x3] ss:$8 sm:$0xf] (!%p241_p9) }
  0x14   : > { %v364_v37 = vrot.slane (!%p241_p9), %v1359_v34, %v1332_v9  ;;  %v376_v38 = vrot.slane (!%p241_p9), %v1359_v34, %v1330_v8  ;;  %v424_v46 = vrot.slane (!%p241_p9), %v1066_v39, %v1334_v10  ;;  %v428_v47 = vrot.slane (!%p241_p9), %v1066_v39, %v1328_v7 }
  0x15   : > { %s273_s15 = scalar_select %p272_p10, %s1295_s28, 1  ;;  %v537_v21 = vcombine.low %v531_v13, %v535_v14  ;;  %v536_v22 = vcombine.low %v523_v15, %v527_v16  ;;  %v420_v56 = vrot.slane %v1066_v39, %v1332_v9  ;;  %v432_v57 = vrot.slane %v1066_v39, %v1330_v8 }
  0x16   : > { %v484_v3 = vrot.slane %v1067_v58, %v1334_v10  ;;  %v488_v4 = vrot.slane %v1067_v58, %v1328_v7  ;;  %vm560_vm3 = vcmp.lt.s32.totalorder %v1354_v33, 127  ;;  %vm310_vm4 = vcmp.lt.s32.totalorder %v1354_v33, 17 }
  0x17   : > { %s1083_s16 = sshll.u32 %s273_s15, 4  ;;  %s1230_s15 = smov 111   ;;  %vm620_vm5 = vcmp.lt.s32.totalorder %v1354_v33, 113  ;;  %vm676_vm6 = vcmp.lt.s32.totalorder %v1354_v33, 112  ;;  %vm732_vm7 = vcmp.lt.s32.totalorder %v1354_v33, 111  ;;  %vm791_vm11 = vcmask 220160  }
  0x18   : > { %s276_s21 = scalar_lea.vmem %s1558_s1, %s1083_s16  ;;  %s1080_s16 = sshll.u32 %s1295_s28, 5 }
  0x19   : > { %v277_v18 = vld [vmem:[%s276_s21] sm:$0x77]  ;;  %v278_v19 = vld [vmem:[%s276_s21 + $0x8] sm:$0x77]  ;;  %s1515_s21 = scalar_lea.hbm %s1564_s7, %s1080_s16 }
  0x8e   : > { %v283_v17 = vpop.permute.xlu0 %282 }
  0x8f   : > { %v290_v20 = vrot.slane %v283_v17, %v289_v12  ;;  %v480_v17 = vrot.slane %v1067_v58, %v1332_v9 }
  0x91   : > { %v292_v23 = vsub.f32 %v277_v18, %v290_v20  ;;  %v293_v24 = vsub.f32 %v278_v19, %v290_v20  ;;  %v492_v18 = vrot.slane %v1067_v58, %v1330_v8  ;;  %v1069_v19 = vld [vmem:[%s1559_s2 + $0x5] ss:$8 sm:$0xf] }
  0x93   : > { %349 = vrot.lane.b32.xlu1 %v293_v24, %s1223_s22  ;;  %345 = vrot.lane.b32.xlu0 %v292_v23, %s1223_s22  ;;  %v541_v25 = vmul.f32 %v537_v21, %v293_v24  ;;  %v540_v26 = vmul.f32 %v536_v22, %v292_v23  ;;  %v297_v27 = vcombine.high %v293_v24, %v293_v24 }
  0x94   : > { %v296_v30 = vcombine.high %v292_v23, %v292_v23 }
  0x95   : > { %551 = vst [vmem:[#allocation2 + $0x38] sm:$0x70] %v541_v25  ;;  %v545_v28 = vcombine.low %v541_v25, %v541_v25  ;;  %549 = vst [vmem:[#allocation2 + $0x28] sm:$0x70] %v540_v26  ;;  %v544_v29 = vcombine.low %v540_v26, %v540_v26 }
  0x97   : > { %401 = vrot.lane.b32.xlu1 %v292_v23, %s1224_s23  ;;  %351 = vrot.lane.b32.xlu0 %v297_v27, %s1223_s22  ;;  %550 = vst [vmem:[#allocation2 + $0x30] sm:$0x70] %v545_v28  ;;  %548 = vst [vmem:[#allocation2 + $0x20] sm:$0x70] %v544_v29  ;;  %v571_v28 = vrot.slane %v1069_v19, %v1332_v9  ;;  %v575_v29 = vrot.slane %v1069_v19, %v1334_v10 }
  0x9b   : > { %405 = vrot.lane.b32.xlu1 %v293_v24, %s1224_s23  ;;  %403 = vrot.lane.b32.xlu0 %v296_v30, %s1224_s23 }
  0x9f   : > { %461 = vrot.lane.b32.xlu1 %v292_v23, %s1225_s29  ;;  %407 = vrot.lane.b32.xlu0 %v297_v27, %s1224_s23  ;;  %s1233_s23 = smov [#allocation3]  }
  0xa3   : > { %465 = vrot.lane.b32.xlu1 %v293_v24, %s1225_s29  ;;  %463 = vrot.lane.b32.xlu0 %v296_v30, %s1225_s29 }
  0xa7   : > { %552 = vrot.lane.b32.xlu1 %v292_v23, %s1226_s8  ;;  %467 = vrot.lane.b32.xlu0 %v297_v27, %s1225_s29  ;;  %s269_s29 = sand.u32 1, %s1211_s25  }
  0xab   : > { %556 = vrot.lane.b32.xlu1 %v293_v24, %s1226_s8  ;;  %554 = vrot.lane.b32.xlu0 %v296_v30, %s1226_s8 }
  0xaf   : > { %300 = vrot.lane.b32.xlu1 %v292_v23, %s1227_s9  ;;  %558 = vrot.lane.b32.xlu0 %v297_v27, %s1226_s8  ;;  %s1062_s8 = sshll.u32 %s269_s29, 1 }
  0xb0   : > { %s271_s17 = scalar_lea.vmem [#allocation3], %s1062_s8  ;;  %s1161_s8 = sshll.u32 %s1233_s23, 4  ;;  %s1162_s8 = int_to_ptr.vmem [resolvable:$false] %s1161_s8 }
  0xb1   : > { %s999_s18 = sshll.u32 %s271_s17, 4  ;;  %s1517_s18 = int_to_ptr.vmem [resolvable:$true] %s999_s18 }
  0xb2   : > { %s1157_s28 = scalar_lea.vmem %s1517_s18, 32  ;;  %p1164_p0 = scmp.lt.s32.totalorder %s1517_s18, %s1162_s8 }
  0xb3   : > { %304 = vrot.lane.b32.xlu1 %v293_v24, %s1227_s9  ;;  %302 = vrot.lane.b32.xlu0 %v296_v30, %s1227_s9  ;;  %p1158_p11 = scmp.ne.s32.totalorder %s1517_s18, %s1157_s28 }
  0xb5   : > { %p1159_p12 = pnand %p1158_p11, %p1312_p5 }
  0xb7   : > { %612 = vrot.lane.b32.xlu1 %v292_v23, %s1228_s13  ;;  %306 = vrot.lane.b32.xlu0 %v297_v27, %s1227_s9  ;;  %p1160_p13 = pneg %p1159_p12  ;;  %s1163_s9 = scalar_lea.vmem %s1162_s8, 64 }
  0xb8   : > { %p1165_p1 = scmp.lt.s32.totalorder %s1163_s9, %s1157_s28 }
  0xba   : > { %p1166_p2 = por %p1165_p1, %p1164_p0 }
  0xbb   : > { %616 = vrot.lane.b32.xlu1 %v293_v24, %s1228_s13  ;;  %614 = vrot.lane.b32.xlu0 %v296_v30, %s1228_s13 }
  0xbc   : > { %p1167_p3 = pnand %p1166_p2, %p1160_p13 }
  0xbf   : > { %668 = vrot.lane.b32.xlu1 %v292_v23, %s1229_s14  ;;  %618 = vrot.lane.b32.xlu0 %v297_v27, %s1228_s13 }
  0xc3   : > { %672 = vrot.lane.b32.xlu1 %v293_v24, %s1229_s14  ;;  %670 = vrot.lane.b32.xlu0 %v296_v30, %s1229_s14 }
  0xc7   : > { %674 = vrot.lane.b32.xlu0 %v297_v27, %s1229_s14  ;;  %347 = vrot.lane.b32.xlu1 %v296_v30, %s1223_s22  ;;  %s986_s22 = scalar_lea.sflag [#allocation4], %s269_s29 }
  0xcb   : > { %726 = vrot.lane.b32.xlu0 %v296_v30, %s1230_s15  ;;  %724 = vrot.lane.b32.xlu1 %v292_v23, %s1230_s15 }
  0xcf   : > { %730 = vrot.lane.b32.xlu0 %v297_v27, %s1230_s15  ;;  %728 = vrot.lane.b32.xlu1 %v293_v24, %s1230_s15 }
  0xd3   : > { %788 = vperm.xlu1 %1156, %v785_v32  }
 0x105   : > { %v1361_v35 = vpop.permute.xlu1 %349  ;;  %v1363_v36 = vpop.permute.xlu0 %345 }
 0x109   : > { %v402_v40 = vpop.permute.xlu1 %401  ;;  %v352_v41 = vpop.permute.xlu0 %351 }
 0x10a   : > { %v354_v42 = vsel %vm353_vm0, %v1361_v35, %v352_v41  ;;  %v357_v43 = vsel %vm353_vm0, %v352_v41, %v1363_v36 }
 0x10b   : > { %v381_v44 = vmul.f32 %v364_v37, %v357_v43  ;;  %v384_v45 = vmul.f32 %v376_v38, %v354_v42  ;;  %v579_v42 = vrot.slane %v1069_v19, %v1328_v7  ;;  %v583_v43 = vrot.slane %v1069_v19, %v1330_v8 }
 0x10d   : > { %v389_v48 = vrot.slane %v381_v44, 5  ;;  %v392_v49 = vrot.slane %v384_v45, 5  ;;  %v406_v50 = vpop.permute.xlu1 %405  ;;  %v404_v51 = vpop.permute.xlu0 %403  ;;  %v315_v44 = vld [vmem:[%s1559_s2] ss:$8 sm:$0xf] }
 0x10e   : > { %v411_v52 = vsel %vm409_vm1, %v404_v51, %v406_v50  ;;  %v412_v53 = vsel %vm409_vm1, %v402_v40, %v404_v51 }
 0x10f   : > { %397 = vst [vmem:[#allocation2] sm:$0x38] %v389_v48  ;;  %400 = vst [vmem:[#allocation2 + $0x18] sm:$0x38] %v392_v49  ;;  %v438_v54 = vmul.f32 %v424_v46, %v412_v53  ;;  %v439_v55 = vmul.f32 %v428_v47, %v411_v52  ;;  %v324_v53 = vrot.slane %v315_v44, %v1334_v10 }
 0x111   : > { %v446_v59 = vrot.slane %v438_v54, 2  ;;  %v447_v60 = vrot.slane %v439_v55, 2  ;;  %v462_v61 = vpop.permute.xlu1 %461  ;;  %v408_v62 = vpop.permute.xlu0 %407  ;;  %v328_v54 = vrot.slane %v315_v44, %v1328_v7 }
 0x112   : > { %v410_v63 = vsel %vm409_vm1, %v406_v50, %v408_v62  ;;  %v413_v0 = vsel %vm409_vm1, %v408_v62, %v402_v40 }
 0x113   : > { %454 = vst [vmem:[#allocation2 + $0x28] ss:$-28 sps:$4 sm:$0xc1] %v446_v59   ;;  %455 = vst [vmem:[#allocation2 + $0x30] ss:$-28 sps:$4 sm:$0xc1] %v447_v60   ;;  %v437_v1 = vmul.f32 %v420_v56, %v413_v0  ;;  %v440_v2 = vmul.f32 %v432_v57, %v410_v63  ;;  %v320_v63 = vrot.slane %v315_v44, %v1332_v9 }
 0x114   : > { %v332_v0 = vrot.slane %v315_v44, %v1330_v8 }
 0x115   : > { %v445_v5 = vrot.slane %v437_v1, 2  ;;  %v448_v6 = vrot.slane %v440_v2, 2  ;;  %v466_v11 = vpop.permute.xlu1 %465  ;;  %v464_v12 = vpop.permute.xlu0 %463  ;;  %v1070_v1 = vld [vmem:[%s1559_s2 + $0x6] ss:$8 sm:$0xf] }
 0x116   : > { %v471_v13 = vsel %vm469_vm2, %v464_v12, %v466_v11  ;;  %v472_v14 = vsel %vm469_vm2, %v462_v61, %v464_v12  ;;  %v631_v12 = vrot.slane %v1070_v1, %v1332_v9 }
 0x117   : > { %453 = vst [vmem:[#allocation2 + $0x20] ss:$-28 sps:$4 sm:$0xc1] %v445_v5   ;;  %456 = vst [vmem:[#allocation2 + $0x38] ss:$-28 sps:$4 sm:$0xc1] %v448_v6   ;;  %v498_v15 = vmul.f32 %v484_v3, %v472_v14  ;;  %v499_v16 = vmul.f32 %v488_v4, %v471_v13  ;;  %v635_v13 = vrot.slane %v1070_v1, %v1334_v10 }
 0x119   : > { %v506_v20 = vrot.slane %v498_v15, 7  ;;  %v507_v21 = vrot.slane %v499_v16, 7  ;;  %v553_v22 = vpop.permute.xlu1 %552  ;;  %v468_v23 = vpop.permute.xlu0 %467 }
 0x11a   : > { %v470_v24 = vsel %vm469_vm2, %v466_v11, %v468_v23  ;;  %v473_v25 = vsel %vm469_vm2, %v468_v23, %v462_v61 }
 0x11b   : > { %514 = vst [vmem:[#allocation2 + $0x28] sm:$0xe] %v506_v20  ;;  %515 = vst [vmem:[#allocation2 + $0x30] sm:$0xe] %v507_v21  ;;  %v497_v26 = vmul.f32 %v480_v17, %v473_v25  ;;  %v500_v27 = vmul.f32 %v492_v18, %v470_v24  ;;  %v639_v20 = vrot.slane %v1070_v1, %v1328_v7 }
 0x11c   : > { %v643_v21 = vrot.slane %v1070_v1, %v1330_v8 }
 0x11d   : > { %v505_v30 = vrot.slane %v497_v26, 7  ;;  %v508_v31 = vrot.slane %v500_v27, 7  ;;  %v557_v32 = vpop.permute.xlu1 %556  ;;  %v555_v37 = vpop.permute.xlu0 %554 }
 0x11e   : > { %v562_v38 = vsel %vm560_vm3, %v555_v37, %v557_v32  ;;  %v563_v39 = vsel %vm560_vm3, %v553_v22, %v555_v37 }
 0x11f   : > { %513 = vst [vmem:[#allocation2 + $0x20] sm:$0xe] %v505_v30  ;;  %516 = vst [vmem:[#allocation2 + $0x38] sm:$0xe] %v508_v31  ;;  %v588_v40 = vmul.f32 %v571_v28, %v563_v39  ;;  %v589_v41 = vmul.f32 %v575_v29, %v562_v38 }
 0x121   : > { %v596_v45 = vrot.slane %v588_v40, 1  ;;  %v597_v46 = vrot.slane %v589_v41, 1  ;;  %v301_v47 = vpop.permute.xlu1 %300  ;;  %v559_v48 = vpop.permute.xlu0 %558 }
 0x122   : > { %v561_v49 = vsel %vm560_vm3, %v557_v32, %v559_v48  ;;  %v564_v50 = vsel %vm560_vm3, %v559_v48, %v553_v22  ;;  %v1071_v22 = vld [vmem:[%s1559_s2 + $0x7] ss:$8 sm:$0xf]  ;;  %v1072_v48 = vld [vmem:[%s1559_s2 + $0x20] ss:$8 sm:$0xf] }
 0x123   : > { %604 = vst [vmem:[#allocation2 + $0x40] ss:$-28 sps:$4 sm:$0x83] %v596_v45   ;;  %605 = vst [vmem:[#allocation2 + $0x48] ss:$-28 sps:$4 sm:$0x83] %v597_v46   ;;  %v590_v51 = vmul.f32 %v579_v42, %v561_v49  ;;  %v591_v52 = vmul.f32 %v583_v43, %v564_v50  ;;  %v687_v31 = vrot.slane %v1071_v22, %v1332_v9 }
 0x124   : > { %v691_v32 = vrot.slane %v1071_v22, %v1334_v10  ;;  %v695_v46 = vrot.slane %v1071_v22, %v1328_v7 }
 0x125   : > { %v598_v55 = vrot.slane %v590_v51, 1  ;;  %v599_v56 = vrot.slane %v591_v52, 1  ;;  %v305_v57 = vpop.permute.xlu1 %304  ;;  %v303_v58 = vpop.permute.xlu0 %302  ;;  %v368_v51 = vrot.slane %v1359_v34, %v1334_v10  ;;  %v372_v52 = vrot.slane %v1359_v34, %v1328_v7 }
 0x126   : > { %v312_v59 = vsel %vm310_vm4, %v303_v58, %v305_v57  ;;  %v313_v60 = vsel %vm310_vm4, %v301_v47, %v303_v58 }
 0x127   : > { %606 = vst [vmem:[#allocation2 + $0x50] ss:$-28 sps:$4 sm:$0x83] %v598_v55   ;;  %607 = vst [vmem:[#allocation2 + $0x58] ss:$-28 sps:$4 sm:$0x83] %v599_v56   ;;  %v338_v61 = vmul.f32 %v324_v53, %v313_v60  ;;  %v339_v62 = vmul.f32 %v328_v54, %v312_v59 }
 0x129   : > { %342 = vst [vmem:[#allocation2 + $0x8] sm:$0x7] %v338_v61  ;;  %343 = vst [vmem:[#allocation2 + $0x10] sm:$0x7] %v339_v62  ;;  %v613_v2 = vpop.permute.xlu1 %612  ;;  %v307_v3 = vpop.permute.xlu0 %306 }
 0x12a   : > { %v311_v4 = vsel %vm310_vm4, %v305_v57, %v307_v3  ;;  %v314_v5 = vsel %vm310_vm4, %v307_v3, %v301_v47  ;;  %v699_v47 = vrot.slane %v1071_v22, %v1330_v8  ;;  %v743_v57 = vrot.slane %v1072_v48, %v1332_v9 }
 0x12b   : > { %v337_v6 = vmul.f32 %v320_v63, %v314_v5  ;;  %v340_v11 = vmul.f32 %v332_v0, %v311_v4 }
 0x12d   : > { %341 = vst [vmem:[#allocation2] sm:$0x7] %v337_v6  ;;  %344 = vst [vmem:[#allocation2 + $0x18] sm:$0x7] %v340_v11  ;;  %v617_v14 = vpop.permute.xlu1 %616  ;;  %v615_v15 = vpop.permute.xlu0 %614  ;;  %v747_v11 = vrot.slane %v1072_v48, %v1334_v10 }
 0x12e   : > { %v622_v16 = vsel %vm620_vm5, %v615_v15, %v617_v14  ;;  %v623_v17 = vsel %vm620_vm5, %v613_v2, %v615_v15  ;;  %v776_v38 = vld [vmem:[#allocation2 + $0x38] sm:$0xff]  ;;  %v775_v22 = vld [vmem:[#allocation2 + $0x30] sm:$0xff] }
 0x12f   : > { %v648_v18 = vmul.f32 %v631_v12, %v623_v17  ;;  %v649_v19 = vmul.f32 %v635_v13, %v622_v16  ;;  %v751_v12 = vrot.slane %v1072_v48, %v1328_v7 }
 0x131   : > { %v656_v23 = vrot.slane %v648_v18, 6  ;;  %v657_v24 = vrot.slane %v649_v19, 6  ;;  %v669_v25 = vpop.permute.xlu1 %668  ;;  %v619_v26 = vpop.permute.xlu0 %618 }
 0x132   : > { %v621_v27 = vsel %vm620_vm5, %v617_v14, %v619_v26  ;;  %v624_v28 = vsel %vm620_vm5, %v619_v26, %v613_v2 }
 0x133   : > { %664 = vst [vmem:[#allocation2 + $0x40] sm:$0x1c] %v656_v23  ;;  %665 = vst [vmem:[#allocation2 + $0x48] sm:$0x1c] %v657_v24  ;;  %v650_v29 = vmul.f32 %v639_v20, %v621_v27  ;;  %v651_v30 = vmul.f32 %v643_v21, %v624_v28 }
 0x134   : > { %v772_v37 = vld [vmem:[#allocation2 + $0x18] sm:$0xff]  ;;  %v769_v7 = vld [vmem:[#allocation2] sm:$0xff] }
 0x135   : > { %v658_v39 = vrot.slane %v650_v29, 6  ;;  %v659_v40 = vrot.slane %v651_v30, 6  ;;  %v673_v41 = vpop.permute.xlu1 %672  ;;  %v671_v42 = vpop.permute.xlu0 %670  ;;  %v1094_v43 = vpack.c.bf16 %v776_v38, %v772_v37 }
 0x136   : > { %v678_v44 = vsel %vm676_vm6, %v671_v42, %v673_v41  ;;  %v679_v45 = vsel %vm676_vm6, %v669_v25, %v671_v42  ;;  %v768_v42 = vld [vmem:[%s1560_s3] sm:$0xff] }
 0x137   : > { %666 = vst [vmem:[#allocation2 + $0x50] sm:$0x1c] %v658_v39  ;;  %667 = vst [vmem:[#allocation2 + $0x58] sm:$0x1c] %v659_v40  ;;  %v704_v49 = vmul.f32 %v687_v31, %v679_v45  ;;  %v705_v50 = vmul.f32 %v691_v32, %v678_v44  ;;  %1095 = vmatprep.subr.bf16.mxu1 %v1094_v43 }
 0x139   : > { %v712_v53 = vrot.slane %v704_v49, 3  ;;  %v713_v54 = vrot.slane %v705_v50, 3  ;;  %v675_v55 = vpop.permute.xlu0 %674  ;;  %v348_v56 = vpop.permute.xlu1 %347 }
 0x13a   : > { %v677_v58 = vsel %vm676_vm6, %v673_v41, %v675_v55  ;;  %v680_v59 = vsel %vm676_vm6, %v675_v55, %v669_v25  ;;  %v355_v60 = vsel %vm353_vm0, %v348_v56, %v1361_v35  ;;  %v356_v34 = vsel %vm353_vm0, %v1363_v36, %v348_v56  ;;  %v773_v25 = vld [vmem:[#allocation2 + $0x20] sm:$0xff] }
 0x13b   : > { %720 = vst [vmem:[#allocation2 + $0x40] sm:$0xe0] %v712_v53  ;;  %721 = vst [vmem:[#allocation2 + $0x48] sm:$0xe0] %v713_v54  ;;  %v706_v61 = vmul.f32 %v695_v46, %v677_v58  ;;  %v707_v62 = vmul.f32 %v699_v47, %v680_v59  ;;  %v382_v63 = vmul.f32 %v368_v51, %v356_v34  ;;  %v974_v58 = vld [vmem:[%s1562_s5] sm:$0xff] }
 0x13c   : > { %v383_v9 = vmul.f32 %v372_v52, %v355_v60  ;;  %v755_v36 = vrot.slane %v1072_v48, %v1330_v8  ;;  %v774_v8 = vld [vmem:[#allocation2 + $0x28] sm:$0xff]  ;;  %v1086_v26 = vpack.c.bf16 %v773_v25, %v769_v7 }
 0x13d   : > { %v714_v0 = vrot.slane %v706_v61, 3  ;;  %v715_v1 = vrot.slane %v707_v62, 3  ;;  %v390_v2 = vrot.slane %v382_v63, 5  ;;  %v727_v4 = vpop.permute.xlu0 %726  ;;  %v725_v5 = vpop.permute.xlu1 %724 }
 0x13e   : > { %v391_v3 = vrot.slane %v383_v9, 5  ;;  %v735_v6 = vsel %vm732_vm7, %v725_v5, %v727_v4 }
 0x13f   : > { %722 = vst [vmem:[#allocation2 + $0x50] sm:$0xe0] %v714_v0  ;;  %723 = vst [vmem:[#allocation2 + $0x58] sm:$0xe0] %v715_v1  ;;  %v760_v35 = vmul.f32 %v743_v57, %v735_v6 }
 0x140   : > { %398 = vst [vmem:[#allocation2 + $0x8] sm:$0x38] %v390_v2  ;;  %399 = vst [vmem:[#allocation2 + $0x10] sm:$0x38] %v391_v3 }
 0x141   : > { %764 = vst [vmem:[#allocation2 + $0x60] sm:$0x7] %v760_v35  ;;  %v731_v13 = vpop.permute.xlu0 %730  ;;  %v729_v14 = vpop.permute.xlu1 %728 }
 0x142   : > { %v736_v15 = vsel %vm732_vm7, %v731_v13, %v725_v5  ;;  %v733_v16 = vsel %vm732_vm7, %v729_v14, %v731_v13  ;;  %v734_v17 = vsel %vm732_vm7, %v727_v4, %v729_v14  ;;  %v778_v33 = vld [vmem:[#allocation2 + $0x48] sm:$0xff]  ;;  %v777_v39 = vld [vmem:[#allocation2 + $0x40] sm:$0xff] }
 0x143   : > { %v763_v18 = vmul.f32 %v755_v36, %v736_v15  ;;  %v761_v19 = vmul.f32 %v747_v11, %v734_v17  ;;  %v762_v20 = vmul.f32 %v751_v12, %v733_v16  ;;  %v967_v11 = vld [vmem:[%s1563_s6] sm:$0x1] }
 0x144   : > { %v982_v12 = vld [vmem:[%s1563_s6] sm:$0x1] }
 0x145   : > { %767 = vst [vmem:[#allocation2 + $0x78] sm:$0x7] %v763_v18  ;;  %765 = vst [vmem:[#allocation2 + $0x68] sm:$0x7] %v761_v19 }
 0x146   : > { %766 = vst [vmem:[#allocation2 + $0x70] sm:$0x7] %v762_v20  ;;  %v780_v27 = vld [vmem:[#allocation2 + $0x58] sm:$0xff]  ;;  %v779_v29 = vld [vmem:[#allocation2 + $0x50] sm:$0xff] }
 0x147   : > { %v770_v10 = vld [vmem:[#allocation2 + $0x8] sm:$0xff]  ;;  %v771_v21 = vld [vmem:[#allocation2 + $0x10] sm:$0xff] }
 0x148   : > { %v1084_v23 = vpack.c.bf16 %v774_v8, %v770_v10  ;;  %v1096_v24 = vpack.c.bf16 %v775_v22, %v771_v21  ;;  %v781_v28 = vld [vmem:[#allocation2 + $0x60] sm:$0x7] }
 0x149   : > { %v1091_v41 = vpack.c.bf16 %v781_v28, %v777_v39 }
 0x14a   : > { %1085 = vmatprep.subr.bf16.mxu0 %v1084_v23  ;;  %1097 = vmatpush1.bf16.msra.mxu1 %v1096_v24 }
 0x14b   : > { %1087 = vmatpush1.bf16.msra.mxu0 %v1086_v26 }
 0x14c   : > { %v782_v30 = vld [vmem:[#allocation2 + $0x68] sm:$0x7]  ;;  %v784_v31 = vld [vmem:[#allocation2 + $0x78] sm:$0x7] }
 0x14d   : > { %v783_v32 = vld [vmem:[#allocation2 + $0x70] sm:$0x7]  ;;  %v1088_v37 = vpack.c.bf16 %v782_v30, %v778_v33  ;;  %v1098_v38 = vpack.c.bf16 %v784_v31, %v780_v27 }
 0x14e   : > { %v1101_v40 = vpack.c.bf16 %v783_v32, %v779_v29 }
 0x14f   : > { %1090 = vmatprep.subr.msk.bf16.mxu0 %vm1089_vm10, %v1088_v37  ;;  %1100 = vmatprep.subr.msk.bf16.mxu1 %vm1089_vm10, %v1098_v38 }
 0x150   : > { %1093 = vmatpush1.bf16.msk.msra.mxu0 %vm1089_vm10, %v1091_v41  ;;  %1103 = vmatpush1.bf16.msk.msra.mxu1 %vm1089_vm10, %v1101_v40 }
 0x152   : > { %v789_v43 = vpop.permute.xlu1 %788 }
 0x153   : > { %1075 = vmatmul.mubr.msk.f32.vlgmr.msra.gmra.mrb[0].mxu0 %vm791_vm11, %v768_v42  ;;  %1078 = vmatmul.mubr.msk.f32.vlgmr.msra.gmra.mrb[0].mxu1 %vm791_vm11, %v768_v42 }
 0x226   : > { %v874_v44 = vpop.f32.mrb[0].mxu0  ;;  %v945_v45 = vpop.f32.mrb[0].mxu1 }
 0x227   : > { %v876_v46 = vpop.f32.mrb[1].mxu0  ;;  %v947_v47 = vpop.f32.mrb[1].mxu1  ;;  %v946_v48 = vadd.f32 %v945_v45, %v789_v43  ;;  %v875_v49 = vadd.f32 %v874_v44, %v789_v43 }
 0x228   : > { %v877_v50 = vadd.f32 %v876_v46, %v789_v43  ;;  %v948_v51 = vadd.f32 %v947_v47, %v789_v43 }
 0x229   : > { %v952_v52 = vmax.f32 %v946_v48, 0.0  ;;  %v950_v53 = vmax.f32 %v875_v49, 0.0 }
 0x22a   : > { %v951_v54 = vmax.f32 %v877_v50, 0.0  ;;  %v953_v55 = vmax.f32 %v948_v51, 0.0 }
 0x22c   : > { %v970_v56 = vadd.f32 %v953_v55, %v952_v52  ;;  %v954_v57 = vadd.f32 %v951_v54, %v950_v53 }
 0x22e   : > { %971 = vadd.xlane.f32.xlu1 %v970_v56  ;;  %955 = vadd.xlane.f32.xlu0 %v954_v57 }
 0x2bb   : > { %v972_v59 = vpop.xlane.xlu1 %971  ;;  %v956_v60 = vpop.xlane.xlu0 %955 }
 0x2bc   : > { %v973_v34 = vmul.f32 0.00390625, %v972_v59  ;;  %v958_v61 = vmul.f32 0.00390625, %v956_v60 }
 0x2be   : > { %v975_v62 = vmul.f32 %v974_v58, %v973_v34  ;;  %v960_v63 = vmul.f32 %v974_v58, %v958_v61 }
 0x2c0   : > { %v976_v9 = vrot.slane %v975_v62, 4  ;;  %v961_v0 = vrot.slane %v960_v63, 4 }
 0x2c2   : > { %v977_v1 = vadd.f32 %v976_v9, %v975_v62  ;;  %v962_v2 = vadd.f32 %v961_v0, %v960_v63 }
 0x2c4   : > { %v978_v3 = vrot.slane %v977_v1, 2  ;;  %v963_v4 = vrot.slane %v962_v2, 2 }
 0x2c6   : > { %v979_v5 = vadd.f32 %v978_v3, %v977_v1  ;;  %v964_v6 = vadd.f32 %v963_v4, %v962_v2 }
 0x2c8   : > { %v980_v35 = vrot.slane %v979_v5, 1  ;;  %v965_v36 = vrot.slane %v964_v6, 1 }
 0x2ca   : > { %v981_v13 = vadd.f32 %v980_v35, %v979_v5  ;;  %v966_v14 = vadd.f32 %v965_v36, %v964_v6 }
 0x2cc   : > { %v968_v15 = vadd.f32 %v967_v11, %v966_v14  ;;  %v983_v16 = vadd.f32 %v982_v12, %v981_v13 }
 0x2ce   : > { %969 = vst [vmem:[%s271_s17] sm:$0x1] %v968_v15  ;;  %984 = vst [vmem:[%s271_s17 + $0x1] sm:$0x1] %v983_v16 }
 0x2cf   : > { %1170 = shalt.err (!%p1167_p3)
}
 0x2d0   : > { %s1171_s29 = scalar_lea.hbm %s1515_s21, 32  ;;  %s1175_s15 = scalar_lea.hbm %s1564_s7, 64 }
 0x2d1   : > { %p1172_p4 = scmp.ne.s32.totalorder %s1515_s21, %s1171_s29  ;;  %p1176_p9 = scmp.lt.u32.totalorder %s1515_s21, %s1564_s7 }
 0x2d2   : > { %p1177_p10 = scmp.lt.u32.totalorder %s1175_s15, %s1171_s29  ;;  %p1179_p12 = scmp.lt.u32.totalorder %s1171_s29, %s1515_s21 }
 0x2d3   : > { %p1173_p7 = pnand %p1172_p4, %p1312_p5 }
 0x2d4   : > { %p1178_p11 = por %p1177_p10, %p1176_p9 }
 0x2d5   : > { %p1174_p8 = pneg %p1173_p7 }
 0x2d6   : > { %p1180_p13 = por %p1179_p12, %p1178_p11 }
 0x2d8   : > { %p1181_p0 = pnand %p1180_p13, %p1174_p8 }
 0x2da   : > { %1184 = shalt.err (!%p1181_p0)
}
 0x2db   : > { %1104 = dma.vmem_to_hbm [thread:$0]  (%p1312_p5), %s1517_s18, 32, %s1515_s21, %s986_s22  }
 0x2dc PF: > { %p1110_p1 = scmp.ge.s32.totalorder %s1219_s27, 2  ;;  %s1011_s19 = sand.u32 1, %s1207_s24  }
 0x2dd   : > { %s1012_s20 = scalar_lea.sflag [#allocation4], %s1011_s19 }
 0x2de   : > { %p1107_p2 = pnand %p1110_p1, %p1316_p6 }
 0x2e0   : > { %1202 = dma.done.wait (!%p1107_p2), %s1012_s20, 32  }
 0x2e1   : > { %1204 = vsyncadd (!%p1107_p2), %s1012_s20, 4294967264  ;;  %p17_p3 = scmp.ge.s32.totalorder %s1299_s30, 4   ;;  %s1567_s24 = smov %s1211_s25 }
 0x2e2   : > { %s1568_s25 = smov %s1215_s26  ;;  %s1569_s26 = smov %s1310_s10 }
 0x2e3   : > { %s1570_s27 = smov %s1299_s30  ;;  %19 = sbr.rel (!%p17_p3) target bundleno = 3 (0x3), region = 91 }
 0x2ea   :  { %1017 = vsyncpa [#allocation4], 1 }
 0x2eb   :  { %1019 = vsyncpa [#allocation4 + $0x1], 1 }

</bundles_post_ra>
